<compile_context>
chip_gen: v5e
topology: v5e:2x2
jax: 0.10.0
libtpu: 0.0.40
codegen_flags: <defaults>
</compile_context>

<pallas_src>
import jax
import jax.numpy as jnp
from jax.experimental import pallas as pl
from jax.experimental.pallas import tpu as pltpu

BN_EPS = 1e-5
DIM_IN = 100        # true input feature count
FEAT = 128          # padded feature width used on the MXU


def _ldisc_kernel(x_ref, w1_ref, w2_ref, w3_ref, vecs_ref, gb4_ref, o_ref, xp_ref):
    """Whole forward pass in VMEM: 4x (Linear -> BatchNorm1d(train) -> act)."""
    n = x_ref.shape[0]
    inv_n = jnp.float32(1.0 / n)

    def bn_fold(z, gamma, beta):
        # One-pass batch statistics (biased variance), folded into scale/shift.
        s = jnp.sum(z, axis=0, keepdims=True)
        ss = jnp.sum(z * z, axis=0, keepdims=True)
        mean = s * inv_n
        var = jnp.maximum(ss * inv_n - mean * mean, 0.0)
        scale = gamma * jax.lax.rsqrt(var + BN_EPS)
        shift = beta - mean * scale
        return z * scale + shift

    vecs = vecs_ref[...]                       # (8, 128) packed small parameters

    # Fused input padding: zero-extend (N, 100) -> (N, 128) inside VMEM.
    xp_ref[:, :DIM_IN] = x_ref[...]
    xp_ref[:, DIM_IN:] = jnp.zeros((n, FEAT - DIM_IN), jnp.float32)

    # Layer 1: 100(->128) -> 128.  bf16 MXU matmul, f32 accumulate.
    # (Linear bias dropped: exactly cancelled by BN batch-mean subtraction.)
    z = jnp.dot(xp_ref[...].astype(jnp.bfloat16), w1_ref[...],
                preferred_element_type=jnp.float32)
    h = jnp.maximum(bn_fold(z, vecs[0:1, :], vecs[1:2, :]), 0.0)

    # Layer 2: 128 -> 128.
    z = jnp.dot(h.astype(jnp.bfloat16), w2_ref[...],
                preferred_element_type=jnp.float32)
    h = jnp.maximum(bn_fold(z, vecs[2:3, :], vecs[3:4, :]), 0.0)

    # Layer 3: 128 -> 128.
    z = jnp.dot(h.astype(jnp.bfloat16), w3_ref[...],
                preferred_element_type=jnp.float32)
    h = jnp.maximum(bn_fold(z, vecs[4:5, :], vecs[5:6, :]), 0.0)

    # Layer 4: 128 -> 1 as f32 VPU multiply + lane reduction (no 1-wide MXU pass).
    z4 = jnp.sum(h * vecs[6:7, :], axis=-1, keepdims=True)          # (N, 1)
    out = jax.nn.sigmoid(bn_fold(z4, gb4_ref[0], gb4_ref[1]))

    # True (N, 1) store: no 128x broadcast write amplification, no wrapper slice.
    o_ref[...] = out.astype(o_ref.dtype)


def pack_params(raw_params):
    """raw_params: list of 4 tuples (w, b, gamma, beta), PyTorch-equivalent.

    Returns (w1p, w2, w3, vecs, gb4):
      w1p          (128, 128) bf16, rows 100..127 zero (fused-pad weight)
      w2, w3       (128, 128) bf16
      vecs         (8, 128) f32: rows 0/1 g1/b1, 2/3 g2/b2, 4/5 g3/b3, 6 = w4 row
      gb4          (2,) f32 SMEM scalars [gamma4, beta4]
    Linear biases are dropped: training-mode BN subtracts the per-feature batch
    mean, so a per-feature constant bias cancels exactly.
    """
    (w1, _, g1, be1), (w2, _, g2, be2), (w3, _, g3, be3), (w4, _, g4, be4) = raw_params
    w1p = jnp.zeros((FEAT, FEAT), jnp.bfloat16)
    w1p = w1p.at[:DIM_IN, :].set(w1.astype(jnp.bfloat16))
    vecs = jnp.zeros((8, FEAT), jnp.float32)
    vecs = vecs.at[0].set(g1.reshape(-1)).at[1].set(be1.reshape(-1))
    vecs = vecs.at[2].set(g2.reshape(-1)).at[3].set(be2.reshape(-1))
    vecs = vecs.at[4].set(g3.reshape(-1)).at[5].set(be3.reshape(-1))
    vecs = vecs.at[6].set(w4.reshape(-1).astype(jnp.float32))
    gb4 = jnp.array([g4.reshape(()), be4.reshape(())], dtype=jnp.float32)
    return (w1p, w2.astype(jnp.bfloat16), w3.astype(jnp.bfloat16), vecs, gb4)


def ldiscriminator_forward(x, packed):
    """x: (N, 100) float32; packed: output of pack_params. Returns (N, 1) f32."""
    w1p, w2, w3, vecs, gb4 = packed
    n = x.shape[0]

    vmem_spec = pl.BlockSpec(memory_space=pltpu.MemorySpace.VMEM)
    smem_spec = pl.BlockSpec(memory_space=pltpu.MemorySpace.SMEM)

    # Generation-aware VMEM budget (v7x: 64 MiB physical; v5e/v6e: 128 MiB).
    try:
        vmem_cap = pltpu.get_tpu_info().vmem_capacity_bytes
    except Exception:  # pragma: no cover - conservative fallback
        vmem_cap = 64 << 20
    weight_bytes = 3 * FEAT * FEAT * 2 + 8 * FEAT * 4 + 2 * 4
    act_bytes = 12 * n * FEAT * 4          # pad scratch + live f32/bf16 slabs
    need = weight_bytes + act_bytes + n * DIM_IN * 4 + (2 << 20)
    vmem_bytes = int(min(int(0.7 * vmem_cap), max(4 << 20, need)))

    return pl.pallas_call(
        _ldisc_kernel,
        out_shape=jax.ShapeDtypeStruct((n, 1), jnp.float32),
        in_specs=[vmem_spec, vmem_spec, vmem_spec, vmem_spec, vmem_spec, smem_spec],
        out_specs=vmem_spec,
        scratch_shapes=[pltpu.VMEM((n, FEAT), jnp.float32)],
        compiler_params=pltpu.CompilerParams(vmem_limit_bytes=vmem_bytes),
    )(x, w1p, w2, w3, vecs, gb4)


def init_params(key):
    """Deterministic synthetic parameters matching the (intended) layer shapes."""
    widths = [(DIM_IN, 128), (128, 128), (128, 128), (128, 1)]
    raw = []
    for i, (fin, fout) in enumerate(widths):
        kw, kb, kg, ke = jax.random.split(jax.random.fold_in(key, i), 4)
        bound = 1.0 / jnp.sqrt(jnp.float32(fin))
        w = jax.random.uniform(kw, (fin, fout), jnp.float32, -bound, bound)
        b = jax.random.uniform(kb, (1, fout), jnp.float32, -bound, bound)
        gamma = 1.0 + 0.1 * jax.random.normal(kg, (1, fout), jnp.float32)  # BN weight
        beta = 0.1 * jax.random.normal(ke, (1, fout), jnp.float32)         # BN bias
        raw.append((w, b, gamma, beta))
    return raw


def reference_forward(x, raw_params, bf16_matmul=False):
    """Pure-JAX reference matching PyTorch semantics (bias kept, two-pass BN)."""
    h = x
    for i, (w, b, g, be) in enumerate(raw_params):
        if bf16_matmul and i < 3:
            z = jnp.dot(h.astype(jnp.bfloat16), w.astype(jnp.bfloat16),
                        preferred_element_type=jnp.float32) + b
        else:
            z = h @ w + b
        mean = jnp.mean(z, axis=0, keepdims=True)
        var = jnp.mean((z - mean) ** 2, axis=0, keepdims=True)
        z = (z - mean) / jnp.sqrt(var + BN_EPS) * g + be
        h = jnp.maximum(z, 0.0) if i < 3 else jax.nn.sigmoid(z)
    return h


if __name__ == "__main__":
    key = jax.random.PRNGKey(0)
    kx, kp = jax.random.split(key)

    n_batch = 8
    x = jax.random.normal(kx, (n_batch, DIM_IN), dtype=jnp.float32)
    raw_params = init_params(kp)
    packed = pack_params(raw_params)

    out = jax.block_until_ready(ldiscriminator_forward(x, packed))
    assert out.shape == (n_batch, 1)

    # Tight check vs a matched-precision (bf16-matmul) reference, looser check vs
    # the pure-f32 reference (bf16 MXU inputs, per the perf review).
    ref_bf16 = reference_forward(x, raw_params, bf16_matmul=True)
    ref_f32 = reference_forward(x, raw_params, bf16_matmul=False)
    assert jnp.allclose(out, ref_bf16, atol=5e-3, rtol=5e-3), "mismatch vs bf16 ref"
    assert jnp.allclose(out, ref_f32, atol=2e-2, rtol=2e-2), "mismatch vs f32 ref"

    print("KERNEL_OK")
</pallas_src>

<mosaic_0001>
module attributes {stable_mosaic.version = 11 : i64} {
  func.func @_ldisc_kernel(%arg0: memref<8x100xf32, #tpu.memory_space<vmem>>, %arg1: memref<128x128xbf16, #tpu.memory_space<vmem>>, %arg2: memref<128x128xbf16, #tpu.memory_space<vmem>>, %arg3: memref<128x128xbf16, #tpu.memory_space<vmem>>, %arg4: memref<8x128xf32, #tpu.memory_space<vmem>>, %arg5: memref<2xf32, #tpu.memory_space<smem>>, %arg6: memref<8x1xf32, #tpu.memory_space<vmem>>, %arg7: memref<8x128xf32, #tpu.memory_space<vmem>>) attributes {dimension_semantics = [], scalar_prefetch = 0 : i64, scratch_operands = 1 : i64, tpu.core_type = #tpu.core_type<tc>} {
    %c0 = arith.constant 0 : index
    %c0_0 = arith.constant 0 : index
    %0 = vector.load %arg4[%c0, %c0_0] : memref<8x128xf32, #tpu.memory_space<vmem>>, vector<8x128xf32>
    %c0_1 = arith.constant 0 : index
    %c0_2 = arith.constant 0 : index
    %1 = vector.load %arg0[%c0_1, %c0_2] : memref<8x100xf32, #tpu.memory_space<vmem>>, vector<8x100xf32>
    %c0_3 = arith.constant 0 : index
    %c0_4 = arith.constant 0 : index
    %2 = vector.load %arg7[%c0_3, %c0_4] : memref<8x128xf32, #tpu.memory_space<vmem>>, vector<8x100xf32>
    tpu.vector_store %arg7[%c0_3, %c0_4], %1 {strides = array<i32>} : memref<8x128xf32, #tpu.memory_space<vmem>>, vector<8x100xf32>,
    %cst = arith.constant 0.000000e+00 : f32
    %3 = vector.broadcast %cst : f32 to vector<8x28xf32>
    %c0_5 = arith.constant 0 : index
    %c100 = arith.constant 100 : index
    %4 = vector.load %arg7[%c0_5, %c100] : memref<8x128xf32, #tpu.memory_space<vmem>>, vector<8x28xf32>
    tpu.vector_store %arg7[%c0_5, %c100], %3 {strides = array<i32>} : memref<8x128xf32, #tpu.memory_space<vmem>>, vector<8x28xf32>,
    %c0_6 = arith.constant 0 : index
    %c0_7 = arith.constant 0 : index
    %5 = vector.load %arg7[%c0_6, %c0_7] : memref<8x128xf32, #tpu.memory_space<vmem>>, vector<8x128xf32>
    %6 = arith.truncf %5 : vector<8x128xf32> to vector<8x128xbf16>
    %c0_8 = arith.constant 0 : index
    %c0_9 = arith.constant 0 : index
    %7 = vector.load %arg1[%c0_8, %c0_9] : memref<128x128xbf16, #tpu.memory_space<vmem>>, vector<128x128xbf16>
    %cst_10 = arith.constant dense<0.000000e+00> : vector<8x128xf32>
    %8 = tpu.matmul %6, %7, %cst_10 {dimension_numbers = #tpu.dot_dimension_numbers<[1], [0], [0], [1], [0, 0, 1, 1], [], []>} : vector<8x128xbf16>, vector<128x128xbf16>, vector<8x128xf32> -> vector<8x128xf32>
    %9 = vector.extract_strided_slice %0 {offsets = [0, 0], sizes = [1, 128], strides = [1, 1]} : vector<8x128xf32> to vector<1x128xf32>
    %10 = vector.extract_strided_slice %0 {offsets = [1, 0], sizes = [1, 128], strides = [1, 1]} : vector<8x128xf32> to vector<1x128xf32>
    %cst_11 = arith.constant dense<0.000000e+00> : vector<128xf32>
    %11 = vector.multi_reduction <add>, %8, %cst_11 [0] : vector<8x128xf32> to vector<128xf32>
    %12 = vector.shape_cast %11 : vector<128xf32> to vector<1x128xf32>
    %13 = arith.mulf %8, %8 : vector<8x128xf32>
    %cst_12 = arith.constant dense<0.000000e+00> : vector<128xf32>
    %14 = vector.multi_reduction <add>, %13, %cst_12 [0] : vector<8x128xf32> to vector<128xf32>
    %15 = vector.shape_cast %14 : vector<128xf32> to vector<1x128xf32>
    %cst_13 = arith.constant 1.250000e-01 : f32
    %16 = vector.broadcast %cst_13 : f32 to vector<1x128xf32>
    %17 = arith.mulf %12, %16 : vector<1x128xf32>
    %cst_14 = arith.constant 1.250000e-01 : f32
    %18 = vector.broadcast %cst_14 : f32 to vector<1x128xf32>
    %19 = arith.mulf %15, %18 : vector<1x128xf32>
    %20 = arith.mulf %17, %17 : vector<1x128xf32>
    %21 = arith.subf %19, %20 : vector<1x128xf32>
    %cst_15 = arith.constant 0.000000e+00 : f32
    %22 = vector.broadcast %cst_15 : f32 to vector<1x128xf32>
    %23 = arith.maximumf %21, %22 : vector<1x128xf32>
    %cst_16 = arith.constant 9.99999974E-6 : f32
    %24 = vector.broadcast %cst_16 : f32 to vector<1x128xf32>
    %25 = arith.addf %23, %24 : vector<1x128xf32>
    %26 = math.rsqrt %25 : vector<1x128xf32>
    %27 = arith.mulf %9, %26 : vector<1x128xf32>
    %28 = arith.mulf %17, %27 : vector<1x128xf32>
    %29 = arith.subf %10, %28 : vector<1x128xf32>
    %30 = vector.broadcast %27 : vector<1x128xf32> to vector<8x128xf32>
    %31 = arith.mulf %8, %30 : vector<8x128xf32>
    %32 = vector.broadcast %29 : vector<1x128xf32> to vector<8x128xf32>
    %33 = arith.addf %31, %32 : vector<8x128xf32>
    %cst_17 = arith.constant 0.000000e+00 : f32
    %34 = vector.broadcast %cst_17 : f32 to vector<8x128xf32>
    %35 = arith.maximumf %33, %34 : vector<8x128xf32>
    %36 = arith.truncf %35 : vector<8x128xf32> to vector<8x128xbf16>
    %c0_18 = arith.constant 0 : index
    %c0_19 = arith.constant 0 : index
    %37 = vector.load %arg2[%c0_18, %c0_19] : memref<128x128xbf16, #tpu.memory_space<vmem>>, vector<128x128xbf16>
    %cst_20 = arith.constant dense<0.000000e+00> : vector<8x128xf32>
    %38 = tpu.matmul %36, %37, %cst_20 {dimension_numbers = #tpu.dot_dimension_numbers<[1], [0], [0], [1], [0, 0, 1, 1], [], []>} : vector<8x128xbf16>, vector<128x128xbf16>, vector<8x128xf32> -> vector<8x128xf32>
    %39 = vector.extract_strided_slice %0 {offsets = [2, 0], sizes = [1, 128], strides = [1, 1]} : vector<8x128xf32> to vector<1x128xf32>
    %40 = vector.extract_strided_slice %0 {offsets = [3, 0], sizes = [1, 128], strides = [1, 1]} : vector<8x128xf32> to vector<1x128xf32>
    %cst_21 = arith.constant dense<0.000000e+00> : vector<128xf32>
    %41 = vector.multi_reduction <add>, %38, %cst_21 [0] : vector<8x128xf32> to vector<128xf32>
    %42 = vector.shape_cast %41 : vector<128xf32> to vector<1x128xf32>
    %43 = arith.mulf %38, %38 : vector<8x128xf32>
    %cst_22 = arith.constant dense<0.000000e+00> : vector<128xf32>
    %44 = vector.multi_reduction <add>, %43, %cst_22 [0] : vector<8x128xf32> to vector<128xf32>
    %45 = vector.shape_cast %44 : vector<128xf32> to vector<1x128xf32>
    %cst_23 = arith.constant 1.250000e-01 : f32
    %46 = vector.broadcast %cst_23 : f32 to vector<1x128xf32>
    %47 = arith.mulf %42, %46 : vector<1x128xf32>
    %cst_24 = arith.constant 1.250000e-01 : f32
    %48 = vector.broadcast %cst_24 : f32 to vector<1x128xf32>
    %49 = arith.mulf %45, %48 : vector<1x128xf32>
    %50 = arith.mulf %47, %47 : vector<1x128xf32>
    %51 = arith.subf %49, %50 : vector<1x128xf32>
    %cst_25 = arith.constant 0.000000e+00 : f32
    %52 = vector.broadcast %cst_25 : f32 to vector<1x128xf32>
    %53 = arith.maximumf %51, %52 : vector<1x128xf32>
    %cst_26 = arith.constant 9.99999974E-6 : f32
    %54 = vector.broadcast %cst_26 : f32 to vector<1x128xf32>
    %55 = arith.addf %53, %54 : vector<1x128xf32>
    %56 = math.rsqrt %55 : vector<1x128xf32>
    %57 = arith.mulf %39, %56 : vector<1x128xf32>
    %58 = arith.mulf %47, %57 : vector<1x128xf32>
    %59 = arith.subf %40, %58 : vector<1x128xf32>
    %60 = vector.broadcast %57 : vector<1x128xf32> to vector<8x128xf32>
    %61 = arith.mulf %38, %60 : vector<8x128xf32>
    %62 = vector.broadcast %59 : vector<1x128xf32> to vector<8x128xf32>
    %63 = arith.addf %61, %62 : vector<8x128xf32>
    %cst_27 = arith.constant 0.000000e+00 : f32
    %64 = vector.broadcast %cst_27 : f32 to vector<8x128xf32>
    %65 = arith.maximumf %63, %64 : vector<8x128xf32>
    %66 = arith.truncf %65 : vector<8x128xf32> to vector<8x128xbf16>
    %c0_28 = arith.constant 0 : index
    %c0_29 = arith.constant 0 : index
    %67 = vector.load %arg3[%c0_28, %c0_29] : memref<128x128xbf16, #tpu.memory_space<vmem>>, vector<128x128xbf16>
    %cst_30 = arith.constant dense<0.000000e+00> : vector<8x128xf32>
    %68 = tpu.matmul %66, %67, %cst_30 {dimension_numbers = #tpu.dot_dimension_numbers<[1], [0], [0], [1], [0, 0, 1, 1], [], []>} : vector<8x128xbf16>, vector<128x128xbf16>, vector<8x128xf32> -> vector<8x128xf32>
    %69 = vector.extract_strided_slice %0 {offsets = [4, 0], sizes = [1, 128], strides = [1, 1]} : vector<8x128xf32> to vector<1x128xf32>
    %70 = vector.extract_strided_slice %0 {offsets = [5, 0], sizes = [1, 128], strides = [1, 1]} : vector<8x128xf32> to vector<1x128xf32>
    %cst_31 = arith.constant dense<0.000000e+00> : vector<128xf32>
    %71 = vector.multi_reduction <add>, %68, %cst_31 [0] : vector<8x128xf32> to vector<128xf32>
    %72 = vector.shape_cast %71 : vector<128xf32> to vector<1x128xf32>
    %73 = arith.mulf %68, %68 : vector<8x128xf32>
    %cst_32 = arith.constant dense<0.000000e+00> : vector<128xf32>
    %74 = vector.multi_reduction <add>, %73, %cst_32 [0] : vector<8x128xf32> to vector<128xf32>
    %75 = vector.shape_cast %74 : vector<128xf32> to vector<1x128xf32>
    %cst_33 = arith.constant 1.250000e-01 : f32
    %76 = vector.broadcast %cst_33 : f32 to vector<1x128xf32>
    %77 = arith.mulf %72, %76 : vector<1x128xf32>
    %cst_34 = arith.constant 1.250000e-01 : f32
    %78 = vector.broadcast %cst_34 : f32 to vector<1x128xf32>
    %79 = arith.mulf %75, %78 : vector<1x128xf32>
    %80 = arith.mulf %77, %77 : vector<1x128xf32>
    %81 = arith.subf %79, %80 : vector<1x128xf32>
    %cst_35 = arith.constant 0.000000e+00 : f32
    %82 = vector.broadcast %cst_35 : f32 to vector<1x128xf32>
    %83 = arith.maximumf %81, %82 : vector<1x128xf32>
    %cst_36 = arith.constant 9.99999974E-6 : f32
    %84 = vector.broadcast %cst_36 : f32 to vector<1x128xf32>
    %85 = arith.addf %83, %84 : vector<1x128xf32>
    %86 = math.rsqrt %85 : vector<1x128xf32>
    %87 = arith.mulf %69, %86 : vector<1x128xf32>
    %88 = arith.mulf %77, %87 : vector<1x128xf32>
    %89 = arith.subf %70, %88 : vector<1x128xf32>
    %90 = vector.broadcast %87 : vector<1x128xf32> to vector<8x128xf32>
    %91 = arith.mulf %68, %90 : vector<8x128xf32>
    %92 = vector.broadcast %89 : vector<1x128xf32> to vector<8x128xf32>
    %93 = arith.addf %91, %92 : vector<8x128xf32>
    %cst_37 = arith.constant 0.000000e+00 : f32
    %94 = vector.broadcast %cst_37 : f32 to vector<8x128xf32>
    %95 = arith.maximumf %93, %94 : vector<8x128xf32>
    %96 = vector.extract_strided_slice %0 {offsets = [6, 0], sizes = [1, 128], strides = [1, 1]} : vector<8x128xf32> to vector<1x128xf32>
    %97 = vector.broadcast %96 : vector<1x128xf32> to vector<8x128xf32>
    %98 = arith.mulf %95, %97 : vector<8x128xf32>
    %cst_38 = arith.constant dense<0.000000e+00> : vector<8xf32>
    %99 = vector.multi_reduction <add>, %98, %cst_38 [1] : vector<8x128xf32> to vector<8xf32>
    %100 = vector.shape_cast %99 : vector<8xf32> to vector<8x1xf32>
    %c0_39 = arith.constant 0 : index
    %101 = memref.load %arg5[%c0_39] : memref<2xf32, #tpu.memory_space<smem>>
    %c1 = arith.constant 1 : index
    %102 = memref.load %arg5[%c1] : memref<2xf32, #tpu.memory_space<smem>>
    %cst_40 = arith.constant dense<0.000000e+00> : vector<1xf32>
    %103 = vector.multi_reduction <add>, %100, %cst_40 [0] : vector<8x1xf32> to vector<1xf32>
    %104 = vector.shape_cast %103 : vector<1xf32> to vector<1x1xf32>
    %105 = arith.mulf %100, %100 : vector<8x1xf32>
    %cst_41 = arith.constant dense<0.000000e+00> : vector<1xf32>
    %106 = vector.multi_reduction <add>, %105, %cst_41 [0] : vector<8x1xf32> to vector<1xf32>
    %107 = vector.shape_cast %106 : vector<1xf32> to vector<1x1xf32>
    %cst_42 = arith.constant 1.250000e-01 : f32
    %108 = vector.broadcast %cst_42 : f32 to vector<1x1xf32>
    %109 = arith.mulf %104, %108 : vector<1x1xf32>
    %cst_43 = arith.constant 1.250000e-01 : f32
    %110 = vector.broadcast %cst_43 : f32 to vector<1x1xf32>
    %111 = arith.mulf %107, %110 : vector<1x1xf32>
    %112 = arith.mulf %109, %109 : vector<1x1xf32>
    %113 = arith.subf %111, %112 : vector<1x1xf32>
    %cst_44 = arith.constant 0.000000e+00 : f32
    %114 = vector.broadcast %cst_44 : f32 to vector<1x1xf32>
    %115 = arith.maximumf %113, %114 : vector<1x1xf32>
    %cst_45 = arith.constant 9.99999974E-6 : f32
    %116 = vector.broadcast %cst_45 : f32 to vector<1x1xf32>
    %117 = arith.addf %115, %116 : vector<1x1xf32>
    %118 = math.rsqrt %117 : vector<1x1xf32>
    %119 = vector.broadcast %101 : f32 to vector<1x1xf32>
    %120 = arith.mulf %119, %118 : vector<1x1xf32>
    %121 = arith.mulf %109, %120 : vector<1x1xf32>
    %122 = vector.broadcast %102 : f32 to vector<1x1xf32>
    %123 = arith.subf %122, %121 : vector<1x1xf32>
    %124 = vector.broadcast %120 : vector<1x1xf32> to vector<8x1xf32>
    %125 = arith.mulf %100, %124 : vector<8x1xf32>
    %126 = vector.broadcast %123 : vector<1x1xf32> to vector<8x1xf32>
    %127 = arith.addf %125, %126 : vector<8x1xf32>
    %128 = arith.negf %127 : vector<8x1xf32>
    %129 = math.exp %128 : vector<8x1xf32>
    %cst_46 = arith.constant 1.000000e+00 : f32
    %130 = vector.broadcast %cst_46 : f32 to vector<8x1xf32>
    %131 = arith.addf %130, %129 : vector<8x1xf32>
    %132 = arith.divf %130, %131 : vector<8x1xf32>
    %c0_47 = arith.constant 0 : index
    %c0_48 = arith.constant 0 : index
    %133 = vector.load %arg6[%c0_47, %c0_48] : memref<8x1xf32, #tpu.memory_space<vmem>>, vector<8x1xf32>
    tpu.vector_store %arg6[%c0_47, %c0_48], %132 {strides = array<i32>} : memref<8x1xf32, #tpu.memory_space<vmem>>, vector<8x1xf32>,
    return
  }
}

</mosaic_0001>

<bundles_post_ra>
// kernel: tpu_custom_call.1
= control target key start
LH: loop header
LB: loop body
LE: loop exit
PB: predicated region body
PF: predicated region fallthrough
CT: control target
= control target key end

     0   :  { %11 = vsyncpa [#allocation4], 0  ;;  %s899_s0 = inlined_call_operand.hbm [shape: f32[8,100], index: 0, kind: input, shape index: {}]   ;;  %s900_s1 = inlined_call_operand.hbm [shape: bf16[128,128], index: 1, kind: input, shape index: {}]   ;;  %s901_s2 = inlined_call_operand.hbm [shape: bf16[128,128], index: 2, kind: input, shape index: {}]   ;;  %s902_s3 = inlined_call_operand.hbm [shape: bf16[128,128], index: 3, kind: input, shape index: {}]   ;;  %s903_s4 = inlined_call_operand.hbm [shape: f32[8,128], index: 4, kind: input, shape index: {}]   ;;  %s904_s5 = inlined_call_operand.vmem [shape: f32[2], index: 5, kind: input, shape index: {}]   ;;  %s905_s6 = inlined_call_operand.vmem [shape: f32[8,1], index: 6, kind: output, shape index: {}]  }
   0x1   :  { %12 = vsyncpa [#allocation7], 0 }
   0x2   :  { %13 = vsyncpa [#allocation10], 0  ;;  %s30_s23 = sshll.u32 %s900_s1, 4  ;;  %s31_s23 = int_to_ptr.hbm [resolvable:$true] %s30_s23 }
   0x3   :  { %14 = vsyncpa [#allocation5], 0  ;;  %s825_s24 = smov [#allocation6]   ;;  %s56_s28 = sshll.u32 %s902_s3, 4  ;;  %s57_s28 = int_to_ptr.hbm [resolvable:$true] %s56_s28 }
   0x4   :  { %s32_s25 = sshll.u32 %s825_s24, 4  ;;  %s826_s29 = smov 64   ;;  %s33_s25 = int_to_ptr.vmem [resolvable:$true] %s32_s25 }
   0x5   :  { %s827_s30 = smov 4   ;;  %s828_s7 = smov [#allocation9]  }
   0x6   :  { %38 = dma.hbm_to_vmem [thread:$0]  %s31_s23, 1024, %s33_s25, [#allocation7], %s826_s29, %s826_s29, %s827_s30  }
   0x7   :  { %s58_s8 = sshll.u32 %s828_s7, 4  ;;  %s20_s11 = sshll.u32 %s899_s0, 4  ;;  %s59_s8 = int_to_ptr.vmem [resolvable:$true] %s58_s8  ;;  %s21_s11 = int_to_ptr.hbm [resolvable:$true] %s20_s11 }
   0x8   :  { %64 = dma.hbm_to_vmem [thread:$0]  %s57_s28, 1024, %s59_s8, [#allocation10], %s826_s29, %s826_s29, %s827_s30  }
   0x9   :  { %s43_s13 = sshll.u32 %s901_s2, 4  ;;  %s829_s14 = smov [#allocation3]   ;;  %s44_s13 = int_to_ptr.hbm [resolvable:$true] %s43_s13 }
   0xa   :  { %s22_s15 = sshll.u32 %s829_s14, 4  ;;  %s830_s3 = smov [#allocation8]   ;;  %s23_s15 = int_to_ptr.vmem [resolvable:$true] %s22_s15 }
   0xb   :  { %25 = dma.hbm_to_vmem [thread:$0]  %s21_s11, 128, %s23_s15, [#allocation4]  }
   0xc   :  { %s45_s16 = sshll.u32 %s830_s3, 4  ;;  %s70_s19 = sshll.u32 %s903_s4, 4  ;;  %s46_s16 = int_to_ptr.vmem [resolvable:$true] %s45_s16  ;;  %s71_s19 = int_to_ptr.hbm [resolvable:$true] %s70_s19 }
   0xd   :  { %51 = dma.hbm_to_vmem [thread:$0]  %s44_s13, 1024, %s46_s16, [#allocation7], %s826_s29, %s826_s29, %s827_s30  }
   0xe   :  { %s81_s21 = sshll.u32 %s904_s5, 4  ;;  %s831_s22 = smov [#allocation11]   ;;  %s82_s21 = int_to_ptr.vmem [resolvable:$true] %s81_s21 }
   0xf   :  { %s72_s2 = sshll.u32 %s831_s22, 4  ;;  %s832_s23 = smov [#allocation12]   ;;  %s73_s2 = int_to_ptr.vmem [resolvable:$true] %s72_s2 }
  0x10   :  { %75 = dma.hbm_to_vmem [thread:$0]  %s71_s19, 128, %s73_s2, [#allocation10]  }
  0x11   :  { %84 = dma.vmem_to_smem %s82_s21, 16, %s832_s23, [#allocation5]  }
  0x12   :  { %817 = dma.done.wait [#allocation4], 128  }
  0x13   :  { %818 = vsyncadd [#allocation4], 4294967168 }
  0x14   :  { %819 = dma.done.wait [#allocation7], 2048  }
  0x15   :  { %820 = vsyncadd [#allocation7], 4294965248 }
  0x16   :  { %821 = dma.done.wait [#allocation10], 1152  }
  0x17   :  { %822 = vsyncadd [#allocation10], 4294966144 }
  0x18   :  { %823 = dma.done.wait [#allocation5], 16  }
  0x19   :  { %824 = vsyncadd [#allocation5], 4294967280 }
  0x1a   :  { %109 = sfence }
  0x1b   :  { %v647_v0 = vld [vmem:[#allocation6 + $0x38] sm:$0xff]  ;;  %vm112_vm0 = vcmask 818176   ;;  %vm114_vm1 = vcmask 1048352   ;;  %v646_v1 = vld [vmem:[#allocation6 + $0x30] sm:$0xff]  ;;  %v833_v3 = vmov 0.0   ;;  %v645_v4 = vld [vmem:[#allocation6 + $0x28] sm:$0xff] }
  0x1c   :  { %182 = vmatpush.bf16.msra.mxu0 %v647_v0  ;;  %v111_v2 = vld [vmem:[#allocation3] sm:$0xff]  ;;  %v644_v5 = vld [vmem:[#allocation6 + $0x20] sm:$0xff]  ;;  %v642_v7 = vld [vmem:[#allocation6 + $0x10] sm:$0xff]  ;;  %s475_s4 = sld [smem:[#allocation12]] }
  0x1d   :  { %113 = vst.msk [vmem:[#allocation2] sm:$0xff] %vm112_vm0, %v111_v2  ;;  %v643_v6 = vld [vmem:[#allocation6 + $0x18] sm:$0xff]  ;;  %v641_v8 = vld [vmem:[#allocation6 + $0x8] sm:$0xff]  ;;  %v640_v9 = vld [vmem:[#allocation6] sm:$0xff]  ;;  %s638_s5 = sld [smem:[#allocation12 + $0x1]] }
  0x1e   :  { %115 = vst.msk [vmem:[#allocation2] sm:$0xff] %vm114_vm1, %v833_v3  ;;  %v655_v12 = vld [vmem:[#allocation8 + $0x38] sm:$0xff]  ;;  %v654_v13 = vld [vmem:[#allocation8 + $0x30] sm:$0xff]  ;;  %v653_v14 = vld [vmem:[#allocation8 + $0x28] sm:$0xff]  ;;  %vm532_vm1 = vcmask 7168  }
  0x1f   :  { %300 = vmatpush.bf16.msra.mxu1 %v655_v12  ;;  %v652_v15 = vld [vmem:[#allocation8 + $0x20] sm:$0xff]  ;;  %v651_v16 = vld [vmem:[#allocation8 + $0x18] sm:$0xff]  ;;  %v650_v20 = vld [vmem:[#allocation8 + $0x10] sm:$0xff] }
  0x20   :  { %183 = vmatpush.bf16.msra.mxu0 %v646_v1  ;;  %v649_v25 = vld [vmem:[#allocation8 + $0x8] sm:$0xff]  ;;  %v648_v31 = vld [vmem:[#allocation8] sm:$0xff]  ;;  %v663_v59 = vld [vmem:[#allocation9 + $0x38] sm:$0xff] }
  0x21   :  { %v887_v46 = vld [vmem:[#allocation11] sm:$0xff]  ;;  %418 = vmatpush.bf16.msra.mxu2 %v663_v59  ;;  %v662_v60 = vld [vmem:[#allocation9 + $0x30] sm:$0xff]  ;;  %v661_v61 = vld [vmem:[#allocation9 + $0x28] sm:$0xff] }
  0x22   :  { %v660_v62 = vld [vmem:[#allocation9 + $0x20] sm:$0xff]  ;;  %v659_v63 = vld [vmem:[#allocation9 + $0x18] sm:$0xff]  ;;  %v658_v3 = vld [vmem:[#allocation9 + $0x10] sm:$0xff] }
  0x23   :  { %301 = vmatpush.bf16.msra.mxu1 %v654_v13 }
  0x24   :  { %184 = vmatpush.bf16.msra.mxu0 %v645_v4 }
  0x25   :  { %v116_v10 = vld [vmem:[#allocation2] sm:$0xff]  ;;  %419 = vmatpush.bf16.msra.mxu2 %v662_v60 }
  0x26   :  { %v117_v11 = vpack.c.bf16 %v116_v10, %v116_v10 }
  0x27   :  { %302 = vmatpush.bf16.msra.mxu1 %v653_v14  ;;  %v656_v14 = vld [vmem:[#allocation9] sm:$0xff] }
  0x28   :  { %185 = vmatpush.bf16.msra.mxu0 %v644_v5 }
  0x29   :  { %420 = vmatpush.bf16.msra.mxu2 %v661_v61 }
  0x2b   :  { %303 = vmatpush.bf16.msra.mxu1 %v652_v15 }
  0x2c   :  { %186 = vmatpush.bf16.msra.mxu0 %v643_v6 }
  0x2d   :  { %421 = vmatpush.bf16.msra.mxu2 %v660_v62 }
  0x2f   :  { %304 = vmatpush.bf16.msra.mxu1 %v651_v16 }
  0x30   :  { %187 = vmatpush.bf16.msra.mxu0 %v642_v7 }
  0x31   :  { %422 = vmatpush.bf16.msra.mxu2 %v659_v63 }
  0x33   :  { %305 = vmatpush.bf16.msra.mxu1 %v650_v20 }
  0x34   :  { %188 = vmatpush.bf16.msra.mxu0 %v641_v8  ;;  %v657_v8 = vld [vmem:[#allocation9 + $0x8] sm:$0xff] }
  0x35   :  { %423 = vmatpush.bf16.msra.mxu2 %v658_v3 }
  0x37   :  { %306 = vmatpush.bf16.msra.mxu1 %v649_v25 }
  0x38   :  { %189 = vmatpush.bf16.msra.mxu0 %v640_v9 }
  0x39   :  { %424 = vmatpush.bf16.msra.mxu2 %v657_v8 }
  0x3b   :  { %190 = vmatmul.bf16.vlgmr.msra.gmra.mxu0 %v117_v11  ;;  %307 = vmatpush.bf16.msra.mxu1 %v648_v31 }
  0x3d   :  { %425 = vmatpush.bf16.msra.mxu2 %v656_v14  ;;  %v471_v14 = vperm.slane %v887_v46, 6 }
  0xb8   :  { %v191_v17 = vpop.f32.mrf.mxu0 }
  0xb9   :  { %v195_v18 = vrot.slane %v191_v17, 4  ;;  %v201_v19 = vmul.f32 %v191_v17, %v191_v17 }
  0xbb   :  { %v196_v21 = vadd.f32 %v195_v18, %v191_v17  ;;  %v202_v22 = vrot.slane %v201_v19, 4 }
  0xbd   :  { %v197_v23 = vrot.slane %v196_v21, 2  ;;  %v203_v24 = vadd.f32 %v202_v22, %v201_v19 }
  0xbf   :  { %v198_v26 = vadd.f32 %v197_v23, %v196_v21  ;;  %v204_v27 = vrot.slane %v203_v24, 2 }
  0xc0   :  { %v193_v28 = vpop.f32.mrf.mxu0 }
  0xc1   :  { %v199_v29 = vrot.slane %v198_v26, 1  ;;  %v205_v30 = vadd.f32 %v204_v27, %v203_v24 }
  0xc3   :  { %v200_v32 = vadd.f32 %v199_v29, %v198_v26  ;;  %v206_v33 = vrot.slane %v205_v30, 1 }
  0xc5   :  { %v207_v34 = vadd.f32 %v206_v33, %v205_v30  ;;  %v208_v35 = vmul.f32 0.125, %v200_v32 }
  0xc7   :  { %v209_v36 = vmul.f32 0.125, %v207_v34  ;;  %v210_v37 = vmul.f32 %v208_v35, %v208_v35 }
  0xc9   :  { %v211_v38 = vsub.f32 %v209_v36, %v210_v37 }
  0xcb   :  { %v212_v39 = vmax.f32 %v211_v38, 0.0 }
  0xcd   :  { %v213_v40 = vadd.f32 1e-05, %v212_v39 }
  0xcf   :  { %673 = vrsqrt.f32 %v213_v40  ;;  %vm220_vm3 = vweird.f32 %v213_v40 }
  0xd5   :  { %v674_v41 = vpop.eup %673 }
  0xd6   :  { %v215_v42 = vmul.f32 %v674_v41, %v213_v40  ;;  %vm221_vm2 = vweird.f32 %v674_v41 }
  0xd7   :  { %vm222_vm4 = vmor %vm220_vm3, %vm221_vm2 }
  0xd8   :  { %v216_v43 = vmul.f32 %v674_v41, %v215_v42 }
  0xda   :  { %v217_v44 = vmul.f32 0.5, %v216_v43 }
  0xdc   :  { %v218_v45 = vsub.f32 1.5, %v217_v44 }
  0xde   :  { %v219_v47 = vmul.f32 %v674_v41, %v218_v45 }
  0xe0   :  { %v223_v48 = vsel %vm222_vm4, %v674_v41, %v219_v47 }
  0xe1   :  { %v224_v49 = vmul.f32 %v223_v48, %v887_v46 }
  0xe3   :  { %v225_v50 = vmul.f32 %v224_v49, %v208_v35  ;;  %v230_v52 = vperm.slane %v224_v49, 0 }
  0xe5   :  { %v227_v51 = vrot.slane %v225_v50, 7  ;;  %v231_v54 = vmul.f32 %v230_v52, %v191_v17 }
  0xe7   :  { %v229_v53 = vsub.f32 %v887_v46, %v227_v51 }
  0xe9   :  { %v232_v55 = vperm.slane %v229_v53, 1 }
  0xeb   :  { %v233_v56 = vadd.f32 %v232_v55, %v231_v54 }
  0xed   :  { %v234_v57 = vmax.f32 %v233_v56, 0.0 }
  0xef   :  { %v235_v58 = vpack.c.bf16 %v234_v57, %v234_v57 }
  0xf1   :  { %308 = vmatmul.bf16.vlgmr.msra.gmra.mxu1 %v235_v58 }
 0x16e   :  { %v309_v0 = vpop.f32.mrf.mxu1 }
 0x16f   :  { %v313_v1 = vrot.slane %v309_v0, 4  ;;  %v319_v2 = vmul.f32 %v309_v0, %v309_v0 }
 0x171   :  { %v314_v4 = vadd.f32 %v313_v1, %v309_v0  ;;  %v320_v5 = vrot.slane %v319_v2, 4 }
 0x173   :  { %v315_v6 = vrot.slane %v314_v4, 2  ;;  %v321_v7 = vadd.f32 %v320_v5, %v319_v2 }
 0x175   :  { %v316_v9 = vadd.f32 %v315_v6, %v314_v4  ;;  %v322_v10 = vrot.slane %v321_v7, 2 }
 0x176   :  { %v311_v11 = vpop.f32.mrf.mxu1 }
 0x177   :  { %v317_v12 = vrot.slane %v316_v9, 1  ;;  %v323_v13 = vadd.f32 %v322_v10, %v321_v7 }
 0x179   :  { %v318_v15 = vadd.f32 %v317_v12, %v316_v9  ;;  %v324_v16 = vrot.slane %v323_v13, 1 }
 0x17b   :  { %v325_v17 = vadd.f32 %v324_v16, %v323_v13  ;;  %v326_v18 = vmul.f32 0.125, %v318_v15 }
 0x17d   :  { %v327_v19 = vmul.f32 0.125, %v325_v17  ;;  %v328_v20 = vmul.f32 %v326_v18, %v326_v18 }
 0x17f   :  { %v329_v21 = vsub.f32 %v327_v19, %v328_v20 }
 0x181   :  { %v330_v22 = vmax.f32 %v329_v21, 0.0 }
 0x183   :  { %v331_v23 = vadd.f32 1e-05, %v330_v22 }
 0x185   :  { %675 = vrsqrt.f32 %v331_v23  ;;  %vm338_vm6 = vweird.f32 %v331_v23 }
 0x18b   :  { %v676_v24 = vpop.eup %675 }
 0x18c   :  { %v333_v25 = vmul.f32 %v676_v24, %v331_v23  ;;  %vm339_vm5 = vweird.f32 %v676_v24 }
 0x18d   :  { %vm340_vm7 = vmor %vm338_vm6, %vm339_vm5 }
 0x18e   :  { %v334_v26 = vmul.f32 %v676_v24, %v333_v25 }
 0x190   :  { %v335_v27 = vmul.f32 0.5, %v334_v26 }
 0x192   :  { %v336_v28 = vsub.f32 1.5, %v335_v27 }
 0x194   :  { %v337_v29 = vmul.f32 %v676_v24, %v336_v28 }
 0x196   :  { %v341_v30 = vsel %vm340_vm7, %v676_v24, %v337_v29 }
 0x197   :  { %v342_v31 = vmul.f32 %v341_v30, %v887_v46 }
 0x199   :  { %v343_v32 = vmul.f32 %v342_v31, %v326_v18  ;;  %v348_v34 = vperm.slane %v342_v31, 2 }
 0x19b   :  { %v345_v33 = vrot.slane %v343_v32, 7  ;;  %v349_v36 = vmul.f32 %v348_v34, %v309_v0 }
 0x19d   :  { %v347_v35 = vsub.f32 %v887_v46, %v345_v33 }
 0x19f   :  { %v350_v37 = vperm.slane %v347_v35, 3 }
 0x1a1   :  { %v351_v38 = vadd.f32 %v350_v37, %v349_v36 }
 0x1a3   :  { %v352_v39 = vmax.f32 %v351_v38, 0.0 }
 0x1a5   :  { %v353_v40 = vpack.c.bf16 %v352_v39, %v352_v39 }
 0x1a7   :  { %426 = vmatmul.bf16.vlgmr.msra.gmra.mxu2 %v353_v40 }
 0x22a   :  { %v427_v41 = vpop.f32.mrf.mxu2 }
 0x22b   :  { %v431_v42 = vrot.slane %v427_v41, 4  ;;  %v437_v43 = vmul.f32 %v427_v41, %v427_v41 }
 0x22d   :  { %v432_v44 = vadd.f32 %v431_v42, %v427_v41  ;;  %v438_v45 = vrot.slane %v437_v43, 4  ;;  %v506_v42 = vstv %s475_s4 }
 0x22f   :  { %v433_v47 = vrot.slane %v432_v44, 2  ;;  %v439_v48 = vadd.f32 %v438_v45, %v437_v43  ;;  %v509_v45 = vstv %s638_s5 }
 0x231   :  { %v434_v49 = vadd.f32 %v433_v47, %v432_v44  ;;  %v440_v50 = vrot.slane %v439_v48, 2 }
 0x232   :  { %v429_v51 = vpop.f32.mrf.mxu2 }
 0x233   :  { %v435_v52 = vrot.slane %v434_v49, 1  ;;  %v441_v53 = vadd.f32 %v440_v50, %v439_v48 }
 0x235   :  { %v436_v54 = vadd.f32 %v435_v52, %v434_v49  ;;  %v442_v55 = vrot.slane %v441_v53, 1 }
 0x237   :  { %v443_v56 = vadd.f32 %v442_v55, %v441_v53  ;;  %v444_v57 = vmul.f32 0.125, %v436_v54 }
 0x239   :  { %v445_v58 = vmul.f32 0.125, %v443_v56  ;;  %v446_v59 = vmul.f32 %v444_v57, %v444_v57 }
 0x23b   :  { %v447_v60 = vsub.f32 %v445_v58, %v446_v59 }
 0x23d   :  { %v448_v61 = vmax.f32 %v447_v60, 0.0 }
 0x23f   :  { %v449_v62 = vadd.f32 1e-05, %v448_v61 }
 0x241   :  { %677 = vrsqrt.f32 %v449_v62  ;;  %vm456_vm9 = vweird.f32 %v449_v62 }
 0x247   :  { %v678_v63 = vpop.eup %677 }
 0x248   :  { %v451_v0 = vmul.f32 %v678_v63, %v449_v62  ;;  %vm457_vm8 = vweird.f32 %v678_v63 }
 0x249   :  { %vm458_vm10 = vmor %vm456_vm9, %vm457_vm8 }
 0x24a   :  { %v452_v1 = vmul.f32 %v678_v63, %v451_v0 }
 0x24c   :  { %v453_v2 = vmul.f32 0.5, %v452_v1 }
 0x24e   :  { %v454_v3 = vsub.f32 1.5, %v453_v2 }
 0x250   :  { %v455_v4 = vmul.f32 %v678_v63, %v454_v3 }
 0x252   :  { %v459_v5 = vsel %vm458_vm10, %v678_v63, %v455_v4 }
 0x253   :  { %v460_v6 = vmul.f32 %v459_v5, %v887_v46 }
 0x255   :  { %v461_v7 = vmul.f32 %v460_v6, %v444_v57  ;;  %v466_v9 = vperm.slane %v460_v6, 4 }
 0x257   :  { %v463_v8 = vrot.slane %v461_v7, 7  ;;  %v467_v11 = vmul.f32 %v466_v9, %v427_v41 }
 0x259   :  { %v465_v10 = vsub.f32 %v887_v46, %v463_v8 }
 0x25b   :  { %v468_v12 = vperm.slane %v465_v10, 5 }
 0x25d   :  { %v469_v13 = vadd.f32 %v468_v12, %v467_v11 }
 0x25f   :  { %v470_v15 = vmax.f32 %v469_v13, 0.0 }
 0x261   :  { %v472_v16 = vmul.f32 %v471_v14, %v470_v15 }
 0x263   :  { %473 = vadd.xlane.f32.xlu0 %v472_v16 }
 0x2d6   :  { %v474_v17 = vpop.xlane.xlu0 %473 }
 0x2d7   :  { %v477_v18 = vrot.slane %v474_v17, 4  ;;  %v483_v19 = vmul.f32 %v474_v17, %v474_v17 }
 0x2d9   :  { %v478_v20 = vadd.f32 %v477_v18, %v474_v17  ;;  %v484_v21 = vrot.slane %v483_v19, 4 }
 0x2db   :  { %v479_v22 = vrot.slane %v478_v20, 2  ;;  %v485_v23 = vadd.f32 %v484_v21, %v483_v19 }
 0x2dd   :  { %v480_v24 = vadd.f32 %v479_v22, %v478_v20  ;;  %v486_v25 = vrot.slane %v485_v23, 2 }
 0x2df   :  { %v481_v26 = vrot.slane %v480_v24, 1  ;;  %v487_v27 = vadd.f32 %v486_v25, %v485_v23 }
 0x2e1   :  { %v482_v28 = vadd.f32 %v481_v26, %v480_v24  ;;  %v488_v29 = vrot.slane %v487_v27, 1 }
 0x2e3   :  { %v489_v30 = vadd.f32 %v488_v29, %v487_v27  ;;  %v490_v31 = vmul.f32 0.125, %v482_v28 }
 0x2e5   :  { %v491_v32 = vmul.f32 0.125, %v489_v30  ;;  %v492_v46 = vmul.f32 %v490_v31, %v490_v31 }
 0x2e7   :  { %v493_v33 = vsub.f32 %v491_v32, %v492_v46 }
 0x2e9   :  { %v494_v34 = vmax.f32 %v493_v33, 0.0 }
 0x2eb   :  { %v495_v35 = vadd.f32 1e-05, %v494_v34 }
 0x2ed   :  { %679 = vrsqrt.f32 %v495_v35  ;;  %vm502_vm12 = vweird.f32 %v495_v35 }
 0x2f3   :  { %v680_v36 = vpop.eup %679 }
 0x2f4   :  { %v497_v37 = vmul.f32 %v680_v36, %v495_v35  ;;  %vm503_vm11 = vweird.f32 %v680_v36 }
 0x2f5   :  { %vm504_vm13 = vmor %vm502_vm12, %vm503_vm11 }
 0x2f6   :  { %v498_v38 = vmul.f32 %v680_v36, %v497_v37 }
 0x2f8   :  { %v499_v39 = vmul.f32 0.5, %v498_v38 }
 0x2fa   :  { %v500_v40 = vsub.f32 1.5, %v499_v39 }
 0x2fc   :  { %v501_v41 = vmul.f32 %v680_v36, %v500_v40 }
 0x2fe   :  { %v505_v43 = vsel %vm504_vm13, %v680_v36, %v501_v41 }
 0x2ff   :  { %v507_v44 = vmul.f32 %v506_v42, %v505_v43 }
 0x301   :  { %v508_v47 = vmul.f32 %v507_v44, %v490_v31  ;;  %v511_v49 = vmul.f32 %v507_v44, %v474_v17 }
 0x303   :  { %v510_v48 = vsub.f32 %v509_v45, %v508_v47 }
 0x305   :  { %v512_v50 = vadd.f32 %v511_v49, %v510_v48 }
 0x307   :  { %v639_v51 = vmul.f32 -1.442695, %v512_v50 }
 0x309   :  { %681 = vpow2.f32 %v639_v51 }
 0x30f   :  { %v682_v52 = vpop.eup %681 }
 0x310   :  { %v516_v53 = vadd.f32 1.0, %v682_v52 }
 0x312   :  { %683 = vrcp.f32 %v516_v53  ;;  %v528_v57 = vand.u32 2147483648, %v516_v53  ;;  %v526_v59 = vand.u32 2147483647, %v516_v53  ;;  %vm522_vm15 = vweird.f32 %v516_v53 }
 0x314   :  { %v529_v61 = vor.u32 1.1754944e-38, %v528_v57  ;;  %vm527_vm2 = vcmp.eq.f32.partialorder %v526_v59, 8.507059e+37 }
 0x318   :  { %v684_v54 = vpop.eup %683 }
 0x319   :  { %v518_v55 = vmul.f32 %v684_v54, %v516_v53  ;;  %vm523_vm14 = vweird.f32 %v684_v54 }
 0x31a   :  { %vm524_vm0 = vmor %vm522_vm15, %vm523_vm14 }
 0x31b   :  { %v519_v56 = vsub.f32 1.0, %v518_v55 }
 0x31d   :  { %v520_v58 = vmul.f32 %v684_v54, %v519_v56 }
 0x31f   :  { %v521_v60 = vadd.f32 %v684_v54, %v520_v58 }
 0x321   :  { %v525_v62 = vsel %vm524_vm0, %v684_v54, %v521_v60 }
 0x322   :  { %v530_v63 = vsel %vm527_vm2, %v529_v61, %v525_v62 }
 0x323   :  { %533 = vst.msk [vmem:[%s905_s6] sm:$0xff] %vm532_vm1, %v530_v63 }
 0x324   :  { %538 = vsyncpa [#allocation4], 1 }
 0x325   :  { %539 = vsyncpa [#allocation7], 1 }
 0x326   :  { %540 = vsyncpa [#allocation10], 1 }
 0x327   :  { %541 = vsyncpa [#allocation5], 1 }

</bundles_post_ra>
